<compile_context>
chip_gen: v7x
topology: tpu7x:2x2x1
jax: 0.10.0
libtpu: 0.0.40
codegen_flags: <defaults>
</compile_context>

<pallas_src>
import jax
import jax.numpy as jnp
from jax.experimental import pallas as pl
from jax.experimental.pallas import tpu as pltpu

_LANE = 128
# 64K lanes -> ~8 MiB of double-buffered VMEM for the f32 in/out tiles.
_MAX_BLOCK_BATCH = 64 * 1024


def _round_up(n: int, m: int) -> int:
    return ((n + m - 1) // m) * m


def _choose_block_batch(batch: int) -> int:
    # Aim for >= 4 grid steps (>= 2 per TensorCore on v7x megacore) while keeping
    # each step's x DMA in the ~1 MB range and VMEM use well under the 32 MiB
    # scoped limit requested below.
    target = -(-batch // 4)  # cdiv(B, 2 cores * 2 blocks/core)
    tb = _round_up(max(target, _LANE), _LANE)
    return min(tb, _MAX_BLOCK_BATCH)


def neuron_iint_kernel(w_ref, b_ref, x_ref, o_ref):
    # w_ref: VMEM (D, 1) f32 -- selected weight column weight[i_input, :, None] (resident)
    # b_ref: SMEM (1,)   f32 -- selected bias bias[i_input]
    # x_ref: VMEM (D, TB)    -- input tile, batch on the lane axis (original dtype)
    # o_ref: VMEM (1, TB) f32 -- sigmoid(x @ W.T + b)[:, i_input] for this tile
    x = x_ref[...].astype(jnp.float32)            # full-width vregs, upcast in-register
    # One full-tile VALU multiply per vreg; 5-way reduction goes to the XLU slot.
    z = jnp.sum(x * w_ref[...], axis=0, keepdims=True) + b_ref[0]
    # Exact sigmoid: exp + true divide (EUP has slack; handles +/-inf exactly).
    o_ref[...] = (1.0 / (1.0 + jnp.exp(-z))).astype(o_ref.dtype)


def neuron_iint_forward(x, weight, bias, i_input, *, block_batch=None, x_transposed=False):
    """Forward pass of NeuronIInt.

    x:      [B, n_dims] (or [n_dims, B] if x_transposed=True), float32 or bfloat16
    weight: [n_targets, n_dims]   (PyTorch nn.Linear layout)
    bias:   [n_targets]
    i_input: Python int column index.
    Returns sigmoid(x @ weight.T + bias)[:, i_input] as float32 of shape [B].
    """
    if x_transposed:
        D, B = x.shape
    else:
        B, D = x.shape
    T = weight.shape[0]

    i_input = int(i_input)
    if not (0 <= i_input < T):  # match PyTorch's indexing error semantics host-side
        raise IndexError(f"i_input={i_input} out of range for n_targets={T}")

    if block_batch is None:
        tb = _choose_block_batch(B)
    else:
        tb = _round_up(int(block_batch), _LANE)
    b_pad = _round_up(B, tb)
    n_blocks = b_pad // tb

    # Layout glue: batch on the lane axis, padded to a lane-tile multiple.
    # Padded columns compute sigmoid(bias) and are sliced off afterwards.
    x_t = x if x_transposed else x.T
    x_t = jnp.pad(x_t, ((0, 0), (0, b_pad - B)))   # keep the caller's dtype in HBM

    # Select the single output neuron in the wrapper: D+1 parameters total.
    w_col = jnp.asarray(weight[i_input], jnp.float32).reshape(D, 1)
    b_sel = jnp.asarray(bias[i_input], jnp.float32).reshape(1)

    out = pl.pallas_call(
        neuron_iint_kernel,
        out_shape=jax.ShapeDtypeStruct((1, b_pad), jnp.float32),
        grid=(n_blocks,),
        in_specs=[
            pl.BlockSpec((D, 1), lambda j: (0, 0)),                 # weight column (resident)
            pl.BlockSpec(memory_space=pltpu.MemorySpace.SMEM),      # bias scalar
            pl.BlockSpec((D, tb), lambda j: (0, j)),                # x, lane-dense tiles
        ],
        out_specs=pl.BlockSpec((1, tb), lambda j: (0, j)),
        compiler_params=pltpu.CompilerParams(
            dimension_semantics=("parallel",),
            vmem_limit_bytes=32 * 1024 * 1024,   # v5e's 16 MiB default would block big tiles
        ),
    )(w_col, b_sel, x_t)

    return out[0, :B]


if __name__ == "__main__":
    n_dims, n_targets = 5, 3
    batch = 4
    i_input = 1

    key = jax.random.PRNGKey(0)
    kx, kw, kb = jax.random.split(key, 3)

    # Mimic nn.Linear's uniform(-1/sqrt(n_dims), 1/sqrt(n_dims)) init.
    bound = 1.0 / jnp.sqrt(jnp.float32(n_dims))
    weight = jax.random.uniform(kw, (n_targets, n_dims), jnp.float32, -bound, bound)
    bias = jax.random.uniform(kb, (n_targets,), jnp.float32, -bound, bound)
    x = jax.random.normal(kx, (batch, n_dims), jnp.float32)

    out = jax.block_until_ready(neuron_iint_forward(x, weight, bias, i_input))
    ref = jax.nn.sigmoid(x @ weight.T + bias)[:, i_input]
    assert out.shape == (batch,)
    assert jnp.allclose(out, ref, atol=1e-4, rtol=1e-4), (out, ref)

    # Non-multiple-of-128 batch with an explicit small tile: exercises the
    # multi-block "parallel" grid + lane-padding path.
    batch2 = 300
    x2 = jax.random.normal(jax.random.PRNGKey(1), (batch2, n_dims), jnp.float32)
    out2 = jax.block_until_ready(
        neuron_iint_forward(x2, weight, bias, 2, block_batch=128)
    )
    ref2 = jax.nn.sigmoid(x2 @ weight.T + bias)[:, 2]
    assert out2.shape == (batch2,)
    assert jnp.allclose(out2, ref2, atol=1e-4, rtol=1e-4), (out2, ref2)

    # Pre-transposed [D, B] input path (no wrapper transpose / extra HBM pass).
    out3 = jax.block_until_ready(
        neuron_iint_forward(x2.T, weight, bias, 2, x_transposed=True)
    )
    assert out3.shape == (batch2,)
    assert jnp.allclose(out3, ref2, atol=1e-4, rtol=1e-4), (out3, ref2)

    print("KERNEL_OK")
</pallas_src>

<mosaic_0001>
module attributes {stable_mosaic.version = 11 : i64} {
  func.func @neuron_iint_kernel(%arg0: i32, %arg1: memref<5x1xf32, #tpu.memory_space<vmem>>, %arg2: memref<1xf32, #tpu.memory_space<smem>>, %arg3: memref<5x128xf32, #tpu.memory_space<vmem>>, %arg4: memref<1x128xf32, #tpu.memory_space<vmem>>) attributes {dimension_semantics = [#tpu.dimension_semantics<parallel>], iteration_bounds = array<i64: 1>, scalar_prefetch = 0 : i64, scratch_operands = 0 : i64, tpu.core_type = #tpu.core_type<tc>, window_params = [{pipeline_mode = #tpu.pipeline_mode<synchronous>, transform_indices = @transform_0, window_bounds = array<i64: 5, 1>}, {transform_indices = @transform_1, window_bounds = array<i64: 1>}, {transform_indices = @transform_2, window_bounds = array<i64: 5, 128>}, {transform_indices = @transform_3, window_bounds = array<i64: 1, 128>}]} {
    %c0 = arith.constant 0 : index
    %c0_0 = arith.constant 0 : index
    %0 = vector.load %arg3[%c0, %c0_0] : memref<5x128xf32, #tpu.memory_space<vmem>>, vector<5x128xf32>
    %c0_1 = arith.constant 0 : index
    %c0_2 = arith.constant 0 : index
    %1 = vector.load %arg1[%c0_1, %c0_2] : memref<5x1xf32, #tpu.memory_space<vmem>>, vector<5x1xf32>
    %2 = vector.broadcast %1 : vector<5x1xf32> to vector<5x128xf32>
    %3 = arith.mulf %0, %2 : vector<5x128xf32>
    %cst = arith.constant dense<0.000000e+00> : vector<128xf32>
    %4 = vector.multi_reduction <add>, %3, %cst [0] : vector<5x128xf32> to vector<128xf32>
    %5 = vector.shape_cast %4 : vector<128xf32> to vector<1x128xf32>
    %c0_3 = arith.constant 0 : index
    %6 = memref.load %arg2[%c0_3] : memref<1xf32, #tpu.memory_space<smem>>
    %7 = vector.broadcast %6 : f32 to vector<1x128xf32>
    %8 = arith.addf %5, %7 : vector<1x128xf32>
    %cst_4 = arith.constant 0.000000e+00 : f32
    %9 = vector.broadcast %cst_4 : f32 to vector<1x128xf32>
    %10 = arith.subf %9, %8 : vector<1x128xf32>
    %11 = math.exp %10 : vector<1x128xf32>
    %cst_5 = arith.constant 1.000000e+00 : f32
    %12 = vector.broadcast %cst_5 : f32 to vector<1x128xf32>
    %13 = arith.addf %12, %11 : vector<1x128xf32>
    %cst_6 = arith.constant 1.000000e+00 : f32
    %14 = vector.broadcast %cst_6 : f32 to vector<1x128xf32>
    %15 = arith.divf %14, %13 : vector<1x128xf32>
    %c0_7 = arith.constant 0 : index
    %c0_8 = arith.constant 0 : index
    %16 = vector.load %arg4[%c0_7, %c0_8] : memref<1x128xf32, #tpu.memory_space<vmem>>, vector<1x128xf32>
    tpu.vector_store %arg4[%c0_7, %c0_8], %15 {strides = array<i32>} : memref<1x128xf32, #tpu.memory_space<vmem>>, vector<1x128xf32>,
    return
  }
  func.func @transform_0(%arg0: i32) -> (i32, i32) {
    %c0_i32 = arith.constant 0 : i32
    %c0_i32_0 = arith.constant 0 : i32
    %c0_i32_1 = arith.constant 0 : i32
    return %c0_i32, %c0_i32_0 : i32, i32
  }
  func.func @transform_1(%arg0: i32) -> i32 {
    %c0_i32 = arith.constant 0 : i32
    %c0_i32_0 = arith.constant 0 : i32
    return %c0_i32 : i32
  }
  func.func @transform_2(%arg0: i32) -> (i32, i32) {
    %c0_i32 = arith.constant 0 : i32
    %c0_i32_0 = arith.constant 0 : i32
    return %c0_i32, %arg0 : i32, i32
  }
  func.func @transform_3(%arg0: i32) -> (i32, i32) {
    %c0_i32 = arith.constant 0 : i32
    %c0_i32_0 = arith.constant 0 : i32
    return %c0_i32, %arg0 : i32, i32
  }
}

</mosaic_0001>

<bundles_post_ra>
// kernel: tpu_custom_call.1
= control target key start
LH: loop header
LB: loop body
LE: loop exit
PB: predicated region body
PF: predicated region fallthrough
CT: control target
= control target key end

     0   :  { %s130_s0 = inlined_call_operand.vmem [shape: f32[5,1], index: 0, kind: input, shape index: {}]   ;;  %s131_s1 = inlined_call_operand.<no memory space> [shape: f32[1], index: 1, kind: input, shape index: {}]   ;;  %s132_s2 = inlined_call_operand.vmem [shape: f32[5,128], index: 2, kind: input, shape index: {}]   ;;  %s133_s3 = inlined_call_operand.hbm [shape: f32[1,128], index: 3, kind: output, shape index: {}]  }
   0x1   :  { %v17_v0 = vld [vmem:[%s130_s0] sm:$0x1f] }
   0x2   :  { %9 = vsyncpa [#allocation4], 0  ;;  %v87_v1 = vmov 0   ;;  %v16_v2 = vld [vmem:[%s132_s2] sm:$0x1f]  ;;  %vm24_vm0 = vcmask 1044480   ;;  %v33_v11 = vstv %s131_s1 }
   0x3   :  { %58 = vset.pattern.permute.xlu0 %v87_v1  ;;  %s88_s0 = smov [#allocation3]  }
   0x4   :  { %20 = vperm.xlu0 %58, %v17_v0   ;;  %s48_s2 = sshll.u32 %s88_s0, 4  ;;  %s49_s2 = int_to_ptr.vmem [resolvable:$true] %s48_s2 }
   0x5   :  { %s63_s18 = scalar_lea.vmem %s49_s2, 16  ;;  %s67_s19 = scalar_lea.vmem %s49_s2, 32 }
   0x6   :  { %p64_p0 = scmp.ne.s32.totalorder %s49_s2, %s63_s18  ;;  %p68_p1 = scmp.lt.s32.totalorder %s49_s2, %s49_s2 }
   0x7   :  { %p69_p2 = scmp.lt.s32.totalorder %s67_s19, %s63_s18 }
   0x9   :  { %p70_p3 = por %p69_p2, %p68_p1 }
   0xb   :  { %p71_p4 = pnand %p70_p3, %p64_p0 }
  0x83   :  { %v21_v3 = vpop.permute.xlu0 %20 }
  0x84   :  { %v23_v4 = vmul.f32 %v21_v3, %v16_v2 }
  0x86   :  { %v25_v5 = vsel %vm24_vm0, %v23_v4, 0.0 }
  0x87   :  { %v26_v6 = vrot.slane %v25_v5, 4 }
  0x89   :  { %v27_v7 = vadd.f32 %v26_v6, %v25_v5 }
  0x8b   :  { %v28_v8 = vrot.slane %v27_v7, 2 }
  0x8d   :  { %v29_v9 = vadd.f32 %v28_v8, %v27_v7 }
  0x8f   :  { %v30_v10 = vrot.slane %v29_v9, 1 }
  0x91   :  { %v31_v12 = vadd.f32 %v30_v10, %v29_v9 }
  0x93   :  { %v34_v13 = vadd.f32 %v33_v11, %v31_v12 }
  0x95   :  { %v35_v14 = vsub.f32 0.0, %v34_v13 }
  0x97   :  { %v36_v15 = vmul.f32 1.442695, %v35_v14 }
  0x99   :  { %59 = vpow2.f32 %v36_v15 }
  0xa3   :  { %v60_v16 = vpop.eup %59 }
  0xa4   :  { %v38_v17 = vadd.f32 1.0, %v60_v16 }
  0xa6   :  { %61 = vrcp.f32 %v38_v17 }
  0xb0   :  { %v62_v18 = vpop.eup %61 }
  0xb1   :  { %41 = vst [vmem:[#allocation3] sm:$0x1] %v62_v18 }
  0xb2   :  { %74 = shalt.err (!%p71_p4)
}
  0xb3   :  { %s75_s21 = scalar_lea.hbm %s133_s3, 16 }
  0xb4   :  { %p76_p5 = scmp.ne.s32.totalorder %s133_s3, %s75_s21  ;;  %p79_p6 = scmp.lt.u32.totalorder %s75_s21, %s133_s3 }
  0xb6   :  { %p81_p7 = pnand %p79_p6, %p76_p5 }
  0xb8   :  { %84 = shalt.err (!%p81_p7)
}
  0xb9   :  { %51 = dma.vmem_to_hbm [thread:$0]  %s49_s2, 16, %s133_s3, [#allocation4]  }
  0xba   :  { %85 = dma.done.wait [#allocation4], 16  }
  0xbb   :  { %86 = vsyncadd [#allocation4], 4294967280 }
  0xbc   :  { %55 = vsyncpa [#allocation4], 1 }

</bundles_post_ra>
